<compile_context>
chip_gen: v7x
topology: tpu7x:2x2x1
jax: 0.10.0
libtpu: 0.0.40
codegen_flags: <defaults>
</compile_context>

<pallas_src>
import jax
import jax.numpy as jnp
import numpy as np
from jax.experimental import pallas as pl
from jax.experimental.pallas import tpu as pltpu


_LANE_HALO = 128  # aligned zero halo -> tap shifts are cheap static lane slices


def _make_kernel(H, W, K, pad):
    """Kernel factory closing over the static conv geometry."""
    P = H * W

    def kernel(x_ref, mask_ref, w1_ref, b1_ref, w2_ref, b2_ref, out_ref):
        R = x_ref.shape[0]                      # rows = batch_chunk * C
        x = x_ref[...]                          # (R, P) f32, lane-dense
        halo = jnp.zeros((R, _LANE_HALO), x.dtype)

        def conv(inp, w_cat, b_col):
            # Zero-extend the flat rows; every tap is a static lane shift.
            full = jnp.concatenate([halo, inp, halo], axis=1)   # (R, P+2*halo)
            taps = []
            t = 0
            for kh in range(K):
                dh = kh - pad
                for kw in range(K):
                    dw = kw - pad
                    start = _LANE_HALO + dh * W + dw
                    xs = full[:, start:start + P]               # (R, P)
                    if dh != 0 or dw != 0:
                        xs = xs * mask_ref[t]                   # (1, P) 0/1 mask
                    taps.append(xs)
                    t += 1
            patches = jnp.concatenate(taps, axis=0)             # (K*K*R, P)
            # One im2col matmul per conv (lane-dense f32 output).
            acc = jnp.dot(w_cat, patches, preferred_element_type=jnp.float32)
            return acc + b_col                                  # bias: one add

        hid = jnp.maximum(conv(x, w1_ref[...], b1_ref[...]), 0.0)
        y = conv(hid, w2_ref[...], b2_ref[...])
        out_ref[...] = jnp.maximum(x + y, 0.0)                  # residual + relu

    return kernel


def _tap_masks(H, W, K, pad):
    """{0,1} validity masks, shape (K*K, 1, H*W), one per conv tap."""
    P = H * W
    h = np.arange(P) // W
    w = np.arange(P) % W
    masks = np.zeros((K * K, 1, P), np.float32)
    t = 0
    for kh in range(K):
        dh = kh - pad
        for kw in range(K):
            dw = kw - pad
            ok = (h + dh >= 0) & (h + dh < H) & (w + dw >= 0) & (w + dw < W)
            masks[t, 0, :] = ok.astype(np.float32)
            t += 1
    return jnp.asarray(masks)


def _pack_conv_weights(w_oihw, nb):
    """OIHW (C_out, C_in, K, K) -> im2col weight (nb*C_out, K*K*nb*C_in),
    block-diagonal over the nb batch elements folded into the sublane axis."""
    C_out, C_in, K, _ = w_oihw.shape
    wt = jnp.transpose(w_oihw, (2, 3, 0, 1))            # (K, K, Co, Ci) (tiny)
    eye = jnp.eye(nb, dtype=w_oihw.dtype)
    big = jnp.einsum('nm,hwoc->nohwmc', eye, wt)        # (nb, Co, K, K, nb, Ci)
    return big.reshape(nb * C_out, K * K * nb * C_in)


def _pick_batch_chunk(N, C, P, vmem_budget=4 << 20):
    """Largest divisor of N whose per-step footprint stays small and whose row
    count (nb*C) is sublane-aligned (or covers the whole array)."""
    best = None
    for nb in range(1, N + 1):
        if N % nb:
            continue
        rows = nb * C
        if rows % 8 != 0 and nb != N:
            continue
        footprint = 4 * rows * P * 4 + 2 * 9 * rows * rows * 4
        if footprint <= vmem_budget or best is None:
            best = nb
    return best


def residual_block_pallas(x_nchw, w1_oihw, b1, w2_oihw, b2, padding=1):
    N, C, H, W = x_nchw.shape
    K = w1_oihw.shape[-1]
    P = H * W
    # TODO(synk): H*W that is not a multiple of 128 needs a lane-padded layout.
    assert P % 128 == 0, "flat spatial dim (H*W) must be a multiple of 128"

    nb = _pick_batch_chunk(N, C, P)
    R = nb * C

    # Contiguous reshape only -- no transpose / pad / extra HBM passes.
    x2d = x_nchw.reshape(N * C, P).astype(jnp.float32)

    masks = _tap_masks(H, W, K, padding)                          # (K*K, 1, P)
    w1c = _pack_conv_weights(w1_oihw.astype(jnp.float32), nb)     # (R, K*K*R)
    w2c = _pack_conv_weights(w2_oihw.astype(jnp.float32), nb)
    b1c = jnp.tile(b1.astype(jnp.float32), nb).reshape(R, 1)
    b2c = jnp.tile(b2.astype(jnp.float32), nb).reshape(R, 1)

    kernel = _make_kernel(H, W, K, padding)

    out2d = pl.pallas_call(
        kernel,
        out_shape=jax.ShapeDtypeStruct((N * C, P), jnp.float32),
        grid_spec=pltpu.PrefetchScalarGridSpec(
            num_scalar_prefetch=0,
            grid=(N // nb,),
            in_specs=[
                pl.BlockSpec((R, P), lambda i: (i, 0)),              # x chunk
                pl.BlockSpec((K * K, 1, P), lambda i: (0, 0, 0)),    # tap masks
                pl.BlockSpec(w1c.shape, lambda i: (0, 0)),           # conv1 W
                pl.BlockSpec((R, 1), lambda i: (0, 0)),              # conv1 b
                pl.BlockSpec(w2c.shape, lambda i: (0, 0)),           # conv2 W
                pl.BlockSpec((R, 1), lambda i: (0, 0)),              # conv2 b
            ],
            out_specs=pl.BlockSpec((R, P), lambda i: (i, 0)),
        ),
        compiler_params=pltpu.CompilerParams(
            dimension_semantics=("parallel",)),
    )(x2d, masks, w1c, b1c, w2c, b2c)

    return out2d.reshape(N, C, H, W)


def _reference_forward(x, w1, b1, w2, b2, padding=1):
    """Pure-JAX reference (mirrors the PyTorch forward semantics)."""
    dn = ('NCHW', 'OIHW', 'NCHW')
    pp = [(padding, padding), (padding, padding)]
    y = jax.lax.conv_general_dilated(x, w1, (1, 1), pp, dimension_numbers=dn)
    y = jnp.maximum(y + b1[None, :, None, None], 0.0)
    y = jax.lax.conv_general_dilated(y, w2, (1, 1), pp, dimension_numbers=dn)
    y = y + b2[None, :, None, None]
    return jnp.maximum(x + y, 0.0)


if __name__ == "__main__":
    # ResidualBlock(num_filters=4, kernel_size=3, padding=1) at small shapes.
    N, C, H, W, K = 2, 4, 16, 16, 3
    key = jax.random.PRNGKey(0)
    kx, k1, kb1, k2, kb2 = jax.random.split(key, 5)

    x = jax.random.normal(kx, (N, C, H, W), dtype=jnp.float32)

    # PyTorch-style uniform(-1/sqrt(fan_in), 1/sqrt(fan_in)) init, deterministic.
    fan_in = C * K * K
    bound = 1.0 / np.sqrt(fan_in)
    w1 = jax.random.uniform(k1, (C, C, K, K), jnp.float32, -bound, bound)
    b1 = jax.random.uniform(kb1, (C,), jnp.float32, -bound, bound)
    w2 = jax.random.uniform(k2, (C, C, K, K), jnp.float32, -bound, bound)
    b2 = jax.random.uniform(kb2, (C,), jnp.float32, -bound, bound)

    out = jax.block_until_ready(residual_block_pallas(x, w1, b1, w2, b2))
    ref = jax.block_until_ready(_reference_forward(x, w1, b1, w2, b2))
    np.testing.assert_allclose(np.asarray(out), np.asarray(ref),
                               rtol=1e-4, atol=1e-4)

    print("KERNEL_OK")
</pallas_src>

<mosaic_0001>
module attributes {stable_mosaic.version = 11 : i64} {
  func.func @kernel(%arg0: i32, %arg1: memref<8x256xf32, #tpu.memory_space<vmem>>, %arg2: memref<9x1x256xf32, #tpu.memory_space<vmem>>, %arg3: memref<8x72xf32, #tpu.memory_space<vmem>>, %arg4: memref<8x1xf32, #tpu.memory_space<vmem>>, %arg5: memref<8x72xf32, #tpu.memory_space<vmem>>, %arg6: memref<8x1xf32, #tpu.memory_space<vmem>>, %arg7: memref<8x256xf32, #tpu.memory_space<vmem>>) attributes {dimension_semantics = [#tpu.dimension_semantics<parallel>], iteration_bounds = array<i64: 1>, scalar_prefetch = 0 : i64, scratch_operands = 0 : i64, tpu.core_type = #tpu.core_type<tc>, window_params = [{transform_indices = @transform_0, window_bounds = array<i64: 8, 256>}, {pipeline_mode = #tpu.pipeline_mode<synchronous>, transform_indices = @transform_1, window_bounds = array<i64: 9, 1, 256>}, {pipeline_mode = #tpu.pipeline_mode<synchronous>, transform_indices = @transform_2, window_bounds = array<i64: 8, 72>}, {pipeline_mode = #tpu.pipeline_mode<synchronous>, transform_indices = @transform_3, window_bounds = array<i64: 8, 1>}, {pipeline_mode = #tpu.pipeline_mode<synchronous>, transform_indices = @transform_4, window_bounds = array<i64: 8, 72>}, {pipeline_mode = #tpu.pipeline_mode<synchronous>, transform_indices = @transform_5, window_bounds = array<i64: 8, 1>}, {transform_indices = @transform_6, window_bounds = array<i64: 8, 256>}]} {
    %c0 = arith.constant 0 : index
    %c0_0 = arith.constant 0 : index
    %0 = vector.load %arg1[%c0, %c0_0] : memref<8x256xf32, #tpu.memory_space<vmem>>, vector<8x256xf32>
    %cst = arith.constant 0.000000e+00 : f32
    %1 = vector.broadcast %cst : f32 to vector<8x128xf32>
    %c0_1 = arith.constant 0 : index
    %c0_2 = arith.constant 0 : index
    %2 = vector.load %arg3[%c0_1, %c0_2] : memref<8x72xf32, #tpu.memory_space<vmem>>, vector<8x72xf32>
    %c0_3 = arith.constant 0 : index
    %c0_4 = arith.constant 0 : index
    %3 = vector.load %arg4[%c0_3, %c0_4] : memref<8x1xf32, #tpu.memory_space<vmem>>, vector<8x1xf32>
    %4 = tpu.concatenate %1, %0, %1 in 1 : vector<8x128xf32>, vector<8x256xf32>, vector<8x128xf32> -> vector<8x512xf32>
    %5 = vector.extract_strided_slice %4 {offsets = [0, 111], sizes = [8, 256], strides = [1, 1]} : vector<8x512xf32> to vector<8x256xf32>
    %c0_5 = arith.constant 0 : index
    %c0_6 = arith.constant 0 : index
    %c0_7 = arith.constant 0 : index
    %6 = vector.load %arg2[%c0_5, %c0_6, %c0_7] : memref<9x1x256xf32, #tpu.memory_space<vmem>>, vector<1x1x256xf32>
    %7 = vector.shape_cast %6 : vector<1x1x256xf32> to vector<1x256xf32>
    %8 = vector.broadcast %7 : vector<1x256xf32> to vector<8x256xf32>
    %9 = arith.mulf %5, %8 : vector<8x256xf32>
    %10 = vector.extract_strided_slice %4 {offsets = [0, 112], sizes = [8, 256], strides = [1, 1]} : vector<8x512xf32> to vector<8x256xf32>
    %c1 = arith.constant 1 : index
    %c0_8 = arith.constant 0 : index
    %c0_9 = arith.constant 0 : index
    %11 = vector.load %arg2[%c1, %c0_8, %c0_9] : memref<9x1x256xf32, #tpu.memory_space<vmem>>, vector<1x1x256xf32>
    %12 = vector.shape_cast %11 : vector<1x1x256xf32> to vector<1x256xf32>
    %13 = vector.broadcast %12 : vector<1x256xf32> to vector<8x256xf32>
    %14 = arith.mulf %10, %13 : vector<8x256xf32>
    %15 = vector.extract_strided_slice %4 {offsets = [0, 113], sizes = [8, 256], strides = [1, 1]} : vector<8x512xf32> to vector<8x256xf32>
    %c2 = arith.constant 2 : index
    %c0_10 = arith.constant 0 : index
    %c0_11 = arith.constant 0 : index
    %16 = vector.load %arg2[%c2, %c0_10, %c0_11] : memref<9x1x256xf32, #tpu.memory_space<vmem>>, vector<1x1x256xf32>
    %17 = vector.shape_cast %16 : vector<1x1x256xf32> to vector<1x256xf32>
    %18 = vector.broadcast %17 : vector<1x256xf32> to vector<8x256xf32>
    %19 = arith.mulf %15, %18 : vector<8x256xf32>
    %20 = vector.extract_strided_slice %4 {offsets = [0, 127], sizes = [8, 256], strides = [1, 1]} : vector<8x512xf32> to vector<8x256xf32>
    %c3 = arith.constant 3 : index
    %c0_12 = arith.constant 0 : index
    %c0_13 = arith.constant 0 : index
    %21 = vector.load %arg2[%c3, %c0_12, %c0_13] : memref<9x1x256xf32, #tpu.memory_space<vmem>>, vector<1x1x256xf32>
    %22 = vector.shape_cast %21 : vector<1x1x256xf32> to vector<1x256xf32>
    %23 = vector.broadcast %22 : vector<1x256xf32> to vector<8x256xf32>
    %24 = arith.mulf %20, %23 : vector<8x256xf32>
    %25 = vector.extract_strided_slice %4 {offsets = [0, 128], sizes = [8, 256], strides = [1, 1]} : vector<8x512xf32> to vector<8x256xf32>
    %26 = vector.extract_strided_slice %4 {offsets = [0, 129], sizes = [8, 256], strides = [1, 1]} : vector<8x512xf32> to vector<8x256xf32>
    %c5 = arith.constant 5 : index
    %c0_14 = arith.constant 0 : index
    %c0_15 = arith.constant 0 : index
    %27 = vector.load %arg2[%c5, %c0_14, %c0_15] : memref<9x1x256xf32, #tpu.memory_space<vmem>>, vector<1x1x256xf32>
    %28 = vector.shape_cast %27 : vector<1x1x256xf32> to vector<1x256xf32>
    %29 = vector.broadcast %28 : vector<1x256xf32> to vector<8x256xf32>
    %30 = arith.mulf %26, %29 : vector<8x256xf32>
    %31 = vector.extract_strided_slice %4 {offsets = [0, 143], sizes = [8, 256], strides = [1, 1]} : vector<8x512xf32> to vector<8x256xf32>
    %c6 = arith.constant 6 : index
    %c0_16 = arith.constant 0 : index
    %c0_17 = arith.constant 0 : index
    %32 = vector.load %arg2[%c6, %c0_16, %c0_17] : memref<9x1x256xf32, #tpu.memory_space<vmem>>, vector<1x1x256xf32>
    %33 = vector.shape_cast %32 : vector<1x1x256xf32> to vector<1x256xf32>
    %34 = vector.broadcast %33 : vector<1x256xf32> to vector<8x256xf32>
    %35 = arith.mulf %31, %34 : vector<8x256xf32>
    %36 = vector.extract_strided_slice %4 {offsets = [0, 144], sizes = [8, 256], strides = [1, 1]} : vector<8x512xf32> to vector<8x256xf32>
    %c7 = arith.constant 7 : index
    %c0_18 = arith.constant 0 : index
    %c0_19 = arith.constant 0 : index
    %37 = vector.load %arg2[%c7, %c0_18, %c0_19] : memref<9x1x256xf32, #tpu.memory_space<vmem>>, vector<1x1x256xf32>
    %38 = vector.shape_cast %37 : vector<1x1x256xf32> to vector<1x256xf32>
    %39 = vector.broadcast %38 : vector<1x256xf32> to vector<8x256xf32>
    %40 = arith.mulf %36, %39 : vector<8x256xf32>
    %41 = vector.extract_strided_slice %4 {offsets = [0, 145], sizes = [8, 256], strides = [1, 1]} : vector<8x512xf32> to vector<8x256xf32>
    %c8 = arith.constant 8 : index
    %c0_20 = arith.constant 0 : index
    %c0_21 = arith.constant 0 : index
    %42 = vector.load %arg2[%c8, %c0_20, %c0_21] : memref<9x1x256xf32, #tpu.memory_space<vmem>>, vector<1x1x256xf32>
    %43 = vector.shape_cast %42 : vector<1x1x256xf32> to vector<1x256xf32>
    %44 = vector.broadcast %43 : vector<1x256xf32> to vector<8x256xf32>
    %45 = arith.mulf %41, %44 : vector<8x256xf32>
    %46 = tpu.concatenate %9, %14, %19, %24, %25, %30, %35, %40, %45 in 0 : vector<8x256xf32>, vector<8x256xf32>, vector<8x256xf32>, vector<8x256xf32>, vector<8x256xf32>, vector<8x256xf32>, vector<8x256xf32>, vector<8x256xf32>, vector<8x256xf32> -> vector<72x256xf32>
    %cst_22 = arith.constant dense<0.000000e+00> : vector<8x256xf32>
    %47 = tpu.matmul %2, %46, %cst_22 {dimension_numbers = #tpu.dot_dimension_numbers<[1], [0], [0], [1], [0, 0, 1, 1], [], []>} : vector<8x72xf32>, vector<72x256xf32>, vector<8x256xf32> -> vector<8x256xf32>
    %48 = vector.broadcast %3 : vector<8x1xf32> to vector<8x256xf32>
    %49 = arith.addf %47, %48 : vector<8x256xf32>
    %cst_23 = arith.constant 0.000000e+00 : f32
    %50 = vector.broadcast %cst_23 : f32 to vector<8x256xf32>
    %51 = arith.maximumf %49, %50 : vector<8x256xf32>
    %c0_24 = arith.constant 0 : index
    %c0_25 = arith.constant 0 : index
    %52 = vector.load %arg5[%c0_24, %c0_25] : memref<8x72xf32, #tpu.memory_space<vmem>>, vector<8x72xf32>
    %c0_26 = arith.constant 0 : index
    %c0_27 = arith.constant 0 : index
    %53 = vector.load %arg6[%c0_26, %c0_27] : memref<8x1xf32, #tpu.memory_space<vmem>>, vector<8x1xf32>
    %54 = tpu.concatenate %1, %51, %1 in 1 : vector<8x128xf32>, vector<8x256xf32>, vector<8x128xf32> -> vector<8x512xf32>
    %55 = vector.extract_strided_slice %54 {offsets = [0, 111], sizes = [8, 256], strides = [1, 1]} : vector<8x512xf32> to vector<8x256xf32>
    %c0_28 = arith.constant 0 : index
    %c0_29 = arith.constant 0 : index
    %c0_30 = arith.constant 0 : index
    %56 = vector.load %arg2[%c0_28, %c0_29, %c0_30] : memref<9x1x256xf32, #tpu.memory_space<vmem>>, vector<1x1x256xf32>
    %57 = vector.shape_cast %56 : vector<1x1x256xf32> to vector<1x256xf32>
    %58 = vector.broadcast %57 : vector<1x256xf32> to vector<8x256xf32>
    %59 = arith.mulf %55, %58 : vector<8x256xf32>
    %60 = vector.extract_strided_slice %54 {offsets = [0, 112], sizes = [8, 256], strides = [1, 1]} : vector<8x512xf32> to vector<8x256xf32>
    %c1_31 = arith.constant 1 : index
    %c0_32 = arith.constant 0 : index
    %c0_33 = arith.constant 0 : index
    %61 = vector.load %arg2[%c1_31, %c0_32, %c0_33] : memref<9x1x256xf32, #tpu.memory_space<vmem>>, vector<1x1x256xf32>
    %62 = vector.shape_cast %61 : vector<1x1x256xf32> to vector<1x256xf32>
    %63 = vector.broadcast %62 : vector<1x256xf32> to vector<8x256xf32>
    %64 = arith.mulf %60, %63 : vector<8x256xf32>
    %65 = vector.extract_strided_slice %54 {offsets = [0, 113], sizes = [8, 256], strides = [1, 1]} : vector<8x512xf32> to vector<8x256xf32>
    %c2_34 = arith.constant 2 : index
    %c0_35 = arith.constant 0 : index
    %c0_36 = arith.constant 0 : index
    %66 = vector.load %arg2[%c2_34, %c0_35, %c0_36] : memref<9x1x256xf32, #tpu.memory_space<vmem>>, vector<1x1x256xf32>
    %67 = vector.shape_cast %66 : vector<1x1x256xf32> to vector<1x256xf32>
    %68 = vector.broadcast %67 : vector<1x256xf32> to vector<8x256xf32>
    %69 = arith.mulf %65, %68 : vector<8x256xf32>
    %70 = vector.extract_strided_slice %54 {offsets = [0, 127], sizes = [8, 256], strides = [1, 1]} : vector<8x512xf32> to vector<8x256xf32>
    %c3_37 = arith.constant 3 : index
    %c0_38 = arith.constant 0 : index
    %c0_39 = arith.constant 0 : index
    %71 = vector.load %arg2[%c3_37, %c0_38, %c0_39] : memref<9x1x256xf32, #tpu.memory_space<vmem>>, vector<1x1x256xf32>
    %72 = vector.shape_cast %71 : vector<1x1x256xf32> to vector<1x256xf32>
    %73 = vector.broadcast %72 : vector<1x256xf32> to vector<8x256xf32>
    %74 = arith.mulf %70, %73 : vector<8x256xf32>
    %75 = vector.extract_strided_slice %54 {offsets = [0, 128], sizes = [8, 256], strides = [1, 1]} : vector<8x512xf32> to vector<8x256xf32>
    %76 = vector.extract_strided_slice %54 {offsets = [0, 129], sizes = [8, 256], strides = [1, 1]} : vector<8x512xf32> to vector<8x256xf32>
    %c5_40 = arith.constant 5 : index
    %c0_41 = arith.constant 0 : index
    %c0_42 = arith.constant 0 : index
    %77 = vector.load %arg2[%c5_40, %c0_41, %c0_42] : memref<9x1x256xf32, #tpu.memory_space<vmem>>, vector<1x1x256xf32>
    %78 = vector.shape_cast %77 : vector<1x1x256xf32> to vector<1x256xf32>
    %79 = vector.broadcast %78 : vector<1x256xf32> to vector<8x256xf32>
    %80 = arith.mulf %76, %79 : vector<8x256xf32>
    %81 = vector.extract_strided_slice %54 {offsets = [0, 143], sizes = [8, 256], strides = [1, 1]} : vector<8x512xf32> to vector<8x256xf32>
    %c6_43 = arith.constant 6 : index
    %c0_44 = arith.constant 0 : index
    %c0_45 = arith.constant 0 : index
    %82 = vector.load %arg2[%c6_43, %c0_44, %c0_45] : memref<9x1x256xf32, #tpu.memory_space<vmem>>, vector<1x1x256xf32>
    %83 = vector.shape_cast %82 : vector<1x1x256xf32> to vector<1x256xf32>
    %84 = vector.broadcast %83 : vector<1x256xf32> to vector<8x256xf32>
    %85 = arith.mulf %81, %84 : vector<8x256xf32>
    %86 = vector.extract_strided_slice %54 {offsets = [0, 144], sizes = [8, 256], strides = [1, 1]} : vector<8x512xf32> to vector<8x256xf32>
    %c7_46 = arith.constant 7 : index
    %c0_47 = arith.constant 0 : index
    %c0_48 = arith.constant 0 : index
    %87 = vector.load %arg2[%c7_46, %c0_47, %c0_48] : memref<9x1x256xf32, #tpu.memory_space<vmem>>, vector<1x1x256xf32>
    %88 = vector.shape_cast %87 : vector<1x1x256xf32> to vector<1x256xf32>
    %89 = vector.broadcast %88 : vector<1x256xf32> to vector<8x256xf32>
    %90 = arith.mulf %86, %89 : vector<8x256xf32>
    %91 = vector.extract_strided_slice %54 {offsets = [0, 145], sizes = [8, 256], strides = [1, 1]} : vector<8x512xf32> to vector<8x256xf32>
    %c8_49 = arith.constant 8 : index
    %c0_50 = arith.constant 0 : index
    %c0_51 = arith.constant 0 : index
    %92 = vector.load %arg2[%c8_49, %c0_50, %c0_51] : memref<9x1x256xf32, #tpu.memory_space<vmem>>, vector<1x1x256xf32>
    %93 = vector.shape_cast %92 : vector<1x1x256xf32> to vector<1x256xf32>
    %94 = vector.broadcast %93 : vector<1x256xf32> to vector<8x256xf32>
    %95 = arith.mulf %91, %94 : vector<8x256xf32>
    %96 = tpu.concatenate %59, %64, %69, %74, %75, %80, %85, %90, %95 in 0 : vector<8x256xf32>, vector<8x256xf32>, vector<8x256xf32>, vector<8x256xf32>, vector<8x256xf32>, vector<8x256xf32>, vector<8x256xf32>, vector<8x256xf32>, vector<8x256xf32> -> vector<72x256xf32>
    %cst_52 = arith.constant dense<0.000000e+00> : vector<8x256xf32>
    %97 = tpu.matmul %52, %96, %cst_52 {dimension_numbers = #tpu.dot_dimension_numbers<[1], [0], [0], [1], [0, 0, 1, 1], [], []>} : vector<8x72xf32>, vector<72x256xf32>, vector<8x256xf32> -> vector<8x256xf32>
    %98 = vector.broadcast %53 : vector<8x1xf32> to vector<8x256xf32>
    %99 = arith.addf %97, %98 : vector<8x256xf32>
    %100 = arith.addf %0, %99 : vector<8x256xf32>
    %cst_53 = arith.constant 0.000000e+00 : f32
    %101 = vector.broadcast %cst_53 : f32 to vector<8x256xf32>
    %102 = arith.maximumf %100, %101 : vector<8x256xf32>
    %c0_54 = arith.constant 0 : index
    %c0_55 = arith.constant 0 : index
    %103 = vector.load %arg7[%c0_54, %c0_55] : memref<8x256xf32, #tpu.memory_space<vmem>>, vector<8x256xf32>
    tpu.vector_store %arg7[%c0_54, %c0_55], %102 {strides = array<i32>} : memref<8x256xf32, #tpu.memory_space<vmem>>, vector<8x256xf32>,
    return
  }
  func.func @transform_0(%arg0: i32) -> (i32, i32) {
    %c0_i32 = arith.constant 0 : i32
    %c0_i32_0 = arith.constant 0 : i32
    return %arg0, %c0_i32 : i32, i32
  }
  func.func @transform_1(%arg0: i32) -> (i32, i32, i32) {
    %c0_i32 = arith.constant 0 : i32
    %c0_i32_0 = arith.constant 0 : i32
    %c0_i32_1 = arith.constant 0 : i32
    %c0_i32_2 = arith.constant 0 : i32
    return %c0_i32, %c0_i32_0, %c0_i32_1 : i32, i32, i32
  }
  func.func @transform_2(%arg0: i32) -> (i32, i32) {
    %c0_i32 = arith.constant 0 : i32
    %c0_i32_0 = arith.constant 0 : i32
    %c0_i32_1 = arith.constant 0 : i32
    return %c0_i32, %c0_i32_0 : i32, i32
  }
  func.func @transform_3(%arg0: i32) -> (i32, i32) {
    %c0_i32 = arith.constant 0 : i32
    %c0_i32_0 = arith.constant 0 : i32
    %c0_i32_1 = arith.constant 0 : i32
    return %c0_i32, %c0_i32_0 : i32, i32
  }
  func.func @transform_4(%arg0: i32) -> (i32, i32) {
    %c0_i32 = arith.constant 0 : i32
    %c0_i32_0 = arith.constant 0 : i32
    %c0_i32_1 = arith.constant 0 : i32
    return %c0_i32, %c0_i32_0 : i32, i32
  }
  func.func @transform_5(%arg0: i32) -> (i32, i32) {
    %c0_i32 = arith.constant 0 : i32
    %c0_i32_0 = arith.constant 0 : i32
    %c0_i32_1 = arith.constant 0 : i32
    return %c0_i32, %c0_i32_0 : i32, i32
  }
  func.func @transform_6(%arg0: i32) -> (i32, i32) {
    %c0_i32 = arith.constant 0 : i32
    %c0_i32_0 = arith.constant 0 : i32
    return %arg0, %c0_i32 : i32, i32
  }
}

</mosaic_0001>

<bundles_post_ra>
// kernel: tpu_custom_call.1
= control target key start
LH: loop header
LB: loop body
LE: loop exit
PB: predicated region body
PF: predicated region fallthrough
CT: control target
= control target key end

     0   :  { %11 = vsyncpa [#allocation3], 0  ;;  %s1478_s0 = inlined_call_operand.hbm [shape: f32[8,256], index: 0, kind: input, shape index: {}]   ;;  %s1479_s1 = inlined_call_operand.vmem [shape: f32[9,1,256], index: 1, kind: input, shape index: {}]   ;;  %s1480_s2 = inlined_call_operand.hbm [shape: f32[8,72], index: 2, kind: input, shape index: {}]   ;;  %s1481_s3 = inlined_call_operand.vmem [shape: f32[8,1], index: 3, kind: input, shape index: {}]   ;;  %s1482_s4 = inlined_call_operand.vmem [shape: f32[8,72], index: 4, kind: input, shape index: {}]   ;;  %s1483_s5 = inlined_call_operand.vmem [shape: f32[8,1], index: 5, kind: input, shape index: {}]   ;;  %s1484_s6 = inlined_call_operand.hbm [shape: f32[8,256], index: 6, kind: output, shape index: {}]  }
   0x1   :  { %12 = vsyncpa [#allocation6], 0 }
   0x2   :  { %13 = vsyncpa [#allocation4], 0  ;;  %s1089_s21 = smov [#allocation2]   ;;  %s1090_s23 = smov [#allocation5]  }
   0x3   :  { %s20_s22 = sshll.u32 %s1089_s21, 4  ;;  %s32_s24 = sshll.u32 %s1090_s23, 4  ;;  %s21_s22 = int_to_ptr.vmem [resolvable:$true] %s20_s22  ;;  %s33_s24 = int_to_ptr.vmem [resolvable:$true] %s32_s24 }
   0x4   :  { %s1017_s27 = scalar_lea.hbm %s1478_s0, 256 }
   0x5   :  { %p1018_p0 = scmp.ne.s32.totalorder %s1478_s0, %s1017_s27  ;;  %p1021_p1 = scmp.lt.u32.totalorder %s1017_s27, %s1478_s0 }
   0x7   :  { %p1023_p2 = pnand %p1021_p1, %p1018_p0 }
   0x9   :  { %1026 = shalt.err (!%p1023_p2)
}
   0xa   :  { %s1027_s8 = scalar_lea.vmem %s21_s22, 256  ;;  %p1032_p4 = scmp.lt.s32.totalorder %s21_s22, %s21_s22 }
   0xb   :  { %p1028_p3 = scmp.ne.s32.totalorder %s21_s22, %s1027_s8  ;;  %p1033_p5 = scmp.lt.s32.totalorder %s1027_s8, %s1027_s8 }
   0xd   :  { %p1034_p6 = por %p1033_p5, %p1032_p4 }
   0xf   :  { %p1035_p7 = pnand %p1034_p6, %p1028_p3 }
  0x11   :  { %1038 = shalt.err (!%p1035_p7)
}
  0x12   :  { %23 = dma.hbm_to_vmem [thread:$0]  %s1478_s0, 256, %s21_s22, [#allocation3]  }
  0x13   :  { %s1039_s13 = scalar_lea.hbm %s1480_s2, 128 }
  0x14   :  { %p1040_p8 = scmp.ne.s32.totalorder %s1480_s2, %s1039_s13  ;;  %p1043_p9 = scmp.lt.u32.totalorder %s1039_s13, %s1480_s2 }
  0x16   :  { %p1045_p10 = pnand %p1043_p9, %p1040_p8 }
  0x18   :  { %1048 = shalt.err (!%p1045_p10)
}
  0x19   :  { %s1049_s18 = scalar_lea.vmem %s33_s24, 128  ;;  %p1054_p12 = scmp.lt.s32.totalorder %s33_s24, %s33_s24 }
  0x1a   :  { %p1050_p11 = scmp.ne.s32.totalorder %s33_s24, %s1049_s18  ;;  %p1055_p13 = scmp.lt.s32.totalorder %s1049_s18, %s1049_s18 }
  0x1c   :  { %p1056_p0 = por %p1055_p13, %p1054_p12 }
  0x1e   :  { %p1057_p1 = pnand %p1056_p0, %p1050_p11 }
  0x20   :  { %1060 = shalt.err (!%p1057_p1)
}
  0x21   :  { %35 = dma.hbm_to_vmem [thread:$0]  %s1480_s2, 128, %s33_s24, [#allocation6]  }
  0x22   :  { %1083 = dma.done.wait [#allocation3], 256  }
  0x23   :  { %1084 = vsyncadd [#allocation3], 4294967040 }
  0x24   :  { %1085 = dma.done.wait [#allocation6], 128  }
  0x25   :  { %1086 = vsyncadd [#allocation6], 4294967168  ;;  %v54_v0 = vlaneseq  ;;  %v772_v4 = vld [vmem:[%s1479_s1 + $0x4] sm:$0x3]  ;;  %v771_v5 = vld [vmem:[%s1479_s1 + $0x2] sm:$0x3] }
  0x26   :  { %s1091_s2 = smov 113   ;;  %s1092_s24 = smov 112   ;;  %v773_v10 = vld [vmem:[%s1479_s1 + $0x6] sm:$0x3]  ;;  %v774_v13 = vld [vmem:[%s1479_s1 + $0xa] sm:$0x3] }
  0x27   :  { %v55_v1 = vshrl.u32 %v54_v0, 7  ;;  %s1093_s29 = smov 127   ;;  %v775_v16 = vld [vmem:[%s1479_s1 + $0xc] sm:$0x3]  ;;  %s1094_s8 = smov 1   ;;  %v1196_v28 = vld [vmem:[#allocation2] sm:$0xff] }
  0x28   :  { %v776_v19 = vld [vmem:[%s1479_s1 + $0xe] sm:$0x3]  ;;  %s1095_s11 = smov 15   ;;  %v777_v22 = vld [vmem:[%s1479_s1 + $0x10] sm:$0x3]  ;;  %s1096_s14 = smov 16  }
  0x29   :  { %v56_v2 = vsub.s32 0, %v55_v1  ;;  %v60_v3 = vsub.s32 1, %v55_v1  ;;  %v52_v25 = vld [vmem:[%s1479_s1] sm:$0x3]  ;;  %s1097_s17 = smov 17   ;;  %v1198_v29 = vld [vmem:[#allocation2 + $0x8] sm:$0xff] }
  0x2a   :  { %s1098_s18 = smov 111   ;;  %v830_v30 = vpack.i.bf16 %v1198_v29, %v1196_v28  ;;  %s1099_s1 = smov 126   ;;  %vm135_vm0 = vcmask 1039360   ;;  %vm89_vm1 = vcmask 916480   ;;  %vm158_vm2 = vcmask 7168  }
  0x2b   :  { %v103_v6 = vrot.slane %v772_v4, %v56_v2  ;;  %v80_v7 = vrot.slane %v771_v5, %v56_v2  ;;  %v107_v8 = vrot.slane %v772_v4, %v60_v3  ;;  %v84_v9 = vrot.slane %v771_v5, %v60_v3  ;;  %s1100_s0 = smov 110   ;;  %s1101_s19 = smov 96  }
  0x2c   :  { %v130_v11 = vrot.slane %v773_v10, %v60_v3  ;;  %v126_v12 = vrot.slane %v773_v10, %v56_v2  ;;  %v153_v14 = vrot.slane %v774_v13, %v60_v3  ;;  %v149_v15 = vrot.slane %v774_v13, %v56_v2  ;;  %s1102_s20 = smov 95   ;;  %s1103_s21 = smov 94  }
  0x2d   :  { %108 = vrot.lane.b32.xlu1 %v103_v6, %s1091_s2  ;;  %85 = vrot.lane.b32.xlu0 %v80_v7, %s1092_s24  ;;  %v176_v17 = vrot.slane %v775_v16, %v60_v3  ;;  %v172_v18 = vrot.slane %v775_v16, %v56_v2  ;;  %v199_v20 = vrot.slane %v776_v19, %v60_v3  ;;  %vm112_vm3 = vcmask 924672   ;;  %s1106_s25 = smov [#allocation7]  }
  0x2e   :  { %v195_v21 = vrot.slane %v776_v19, %v56_v2  ;;  %v222_v23 = vrot.slane %v777_v22, %v60_v3  ;;  %v218_v24 = vrot.slane %v777_v22, %v56_v2  ;;  %v57_v26 = vrot.slane %v52_v25, %v56_v2  ;;  %s761_s26 = sshll.u32 %s1106_s25, 4  ;;  %s762_s26 = int_to_ptr.vmem [resolvable:$true] %s761_s26 }
  0x2f   :  { %v61_v27 = vrot.slane %v52_v25, %v60_v3  ;;  %vm181_vm4 = vcmask 121856   ;;  %vm204_vm5 = vcmask 130048   ;;  %vm227_vm6 = vcmask 138240   ;;  %p1066_p3 = scmp.lt.s32.totalorder %s762_s26, %s762_s26 }
  0x30   :  { %vm66_vm7 = vcmask 908288   ;;  %vm255_vm8 = vcmask 1031168   ;;  %vm309_vm9 = vcmask 777216   ;;  %vm285_vm10 = vcmask 900096  }
  0x31   :  { %110 = vrot.lane.b32.xlu1 %v107_v8, %s1091_s2  ;;  %87 = vrot.lane.b32.xlu0 %v84_v9, %s1092_s24  ;;  %vm297_vm11 = vcmask 785408   ;;  %vm321_vm12 = vcmask 769024   ;;  %vm422_vm13 = vcmask 588800  }
  0x35   :  { %133 = vrot.lane.b32.xlu1 %v130_v11, %s1093_s29  ;;  %131 = vrot.lane.b32.xlu0 %v126_v12, %s1093_s29 }
  0x39   :  { %156 = vrot.lane.b32.xlu1 %v153_v14, %s1094_s8  ;;  %154 = vrot.lane.b32.xlu0 %v149_v15, %s1094_s8 }
  0x3d   :  { %179 = vrot.lane.b32.xlu1 %v176_v17, %s1095_s11  ;;  %177 = vrot.lane.b32.xlu0 %v172_v18, %s1095_s11 }
  0x41   :  { %202 = vrot.lane.b32.xlu1 %v199_v20, %s1096_s14  ;;  %200 = vrot.lane.b32.xlu0 %v195_v21, %s1096_s14 }
  0x45   :  { %225 = vrot.lane.b32.xlu1 %v222_v23, %s1097_s17  ;;  %223 = vrot.lane.b32.xlu0 %v218_v24, %s1097_s17 }
  0x49   :  { %62 = vrot.lane.b32.xlu0 %v57_v26, %s1098_s18  ;;  %64 = vrot.lane.b32.xlu1 %v61_v27, %s1098_s18 }
  0x4d   :  { %831 = vrot.lane.b32.xlu0 %v830_v30, %s1098_s18 }
  0x9f   :  { %v109_v31 = vpop.permute.xlu1 %108  ;;  %v86_v32 = vpop.permute.xlu0 %85 }
  0xa0   :  { %v117_v33 = vmul.f32 0.0, %v109_v31  ;;  %v94_v34 = vmul.f32 0.0, %v86_v32 }
  0xa2   :  { %249 = vrot.lane.b32.xlu0 %v117_v33, %s1099_s1  ;;  %238 = vrot.lane.b32.xlu1 %v94_v34, %s1093_s29 }
  0xa3   :  { %v1207_v35 = vpop.permute.xlu1 %110  ;;  %v1209_v36 = vpop.permute.xlu0 %87 }
  0xa4   :  { %v1221_v42 = vsel %vm89_vm1, %v86_v32, %v1209_v36  ;;  %v96_v44 = vmul.f32 %v1209_v36, %v1198_v29  ;;  %v1238_v52 = vsel %vm112_vm3, %v109_v31, %v1207_v35  ;;  %v119_v54 = vmul.f32 %v1207_v35, %v1198_v29 }
  0xa5   :  { %v95_v48 = vmul.f32 %v1221_v42, %v1196_v28  ;;  %v118_v58 = vmul.f32 %v1238_v52, %v1196_v28 }
  0xa7   :  { %v1211_v37 = vpop.permute.xlu1 %133  ;;  %v132_v38 = vpop.permute.xlu0 %131  ;;  %v835_v59 = vpack.i.bf16 %v96_v44, %v95_v48  ;;  %v840_v2 = vpack.i.bf16 %v119_v54, %v118_v58 }
  0xa8   :  { %v142_v39 = vmul.f32 %v1211_v37, %v1198_v29  ;;  %v1217_v40 = vsel %vm135_vm0, %v132_v38, %v1211_v37  ;;  %v140_v41 = vmul.f32 0.0, %v132_v38 }
  0xa9   :  { %v141_v43 = vmul.f32 %v1217_v40, %v1196_v28 }
  0xaa   :  { %261 = vrot.lane.b32.xlu1 %v140_v41, %s1092_s24 }
  0xab   :  { %v157_v45 = vpop.permute.xlu1 %156  ;;  %v1228_v46 = vpop.permute.xlu0 %154  ;;  %v845_v47 = vpack.i.bf16 %v142_v39, %v141_v43 }
  0xac   :  { %v165_v49 = vmul.f32 0.0, %v157_v45  ;;  %v1233_v50 = vsel %vm158_vm2, %v1228_v46, %v157_v45  ;;  %v163_v51 = vmul.f32 %v1228_v46, %v1196_v28 }
  0xad   :  { %v164_v53 = vmul.f32 %v1233_v50, %v1198_v29 }
  0xae   :  { %283 = vrot.lane.b32.xlu0 %v165_v49, %s1100_s0  ;;  %846 = vrot.lane.b32.xlu1 %v845_v47, %s1092_s24 }
  0xaf   :  { %v850_v55 = vpack.i.bf16 %v164_v53, %v163_v51  ;;  %v180_v56 = vpop.permute.xlu1 %179  ;;  %v1246_v57 = vpop.permute.xlu0 %177 }
  0xb0   :  { %v1251_v60 = vsel %vm181_vm4, %v1246_v57, %v180_v56  ;;  %v186_v61 = vmul.f32 %v1246_v57, %v1196_v28  ;;  %v188_v6 = vmul.f32 0.0, %v180_v56 }
  0xb1   :  { %v187_v62 = vmul.f32 %v1251_v60, %v1198_v29 }
  0xb2   :  { %851 = vrot.lane.b32.xlu1 %v850_v55, %s1100_s0  ;;  %836 = vrot.lane.b32.xlu0 %v835_v59, %s1093_s29 }
  0xb3   :  { %v203_v63 = vpop.permute.xlu1 %202  ;;  %v1259_v0 = vpop.permute.xlu0 %200  ;;  %v855_v1 = vpack.i.bf16 %v187_v62, %v186_v61 }
  0xb4   :  { %v1262_v3 = vsel %vm204_vm5, %v1259_v0, %v203_v63  ;;  %v209_v4 = vmul.f32 %v1259_v0, %v1196_v28  ;;  %v211_v10 = vmul.f32 0.0, %v203_v63 }
  0xb5   :  { %v210_v5 = vmul.f32 %v1262_v3, %v1198_v29 }
  0xb6   :  { %841 = vrot.lane.b32.xlu0 %v840_v2, %s1099_s1  ;;  %856 = vrot.lane.b32.xlu1 %v855_v1, %s1101_s19 }
  0xb7   :  { %v860_v7 = vpack.i.bf16 %v210_v5, %v209_v4  ;;  %v1270_v8 = vpop.permute.xlu0 %223  ;;  %v226_v9 = vpop.permute.xlu1 %225 }
  0xb8   :  { %v232_v11 = vmul.f32 %v1270_v8, %v1196_v28  ;;  %v1278_v12 = vsel %vm227_vm6, %v1270_v8, %v226_v9  ;;  %v234_v15 = vmul.f32 0.0, %v226_v9 }
  0xb9   :  { %v233_v16 = vmul.f32 %v1278_v12, %v1198_v29 }
  0xba   :  { %295 = vrot.lane.b32.xlu0 %v188_v6, %s1101_s19  ;;  %861 = vrot.lane.b32.xlu1 %v860_v7, %s1102_s20 }
  0xbb   :  { %v63_v13 = vpop.permute.xlu0 %62  ;;  %v1280_v14 = vpop.permute.xlu1 %64 }
  0xbc   :  { %v1288_v18 = vsel %vm66_vm7, %v63_v13, %v1280_v14  ;;  %v73_v23 = vmul.f32 %v1280_v14, %v1198_v29  ;;  %v71_v44 = vmul.f32 0.0, %v63_v13 }
  0xbd   :  { %v72_v22 = vmul.f32 %v1288_v18, %v1196_v28 }
  0xbe   :  { %307 = vrot.lane.b32.xlu0 %v211_v10, %s1102_s20  ;;  %315 = vrot.lane.b32.xlu1 %v232_v11, %s1103_s21 }
  0xbf   :  { %v832_v17 = vpop.permute.xlu0 %831  ;;  %v870_v25 = vpack.i.bf16 %v73_v23, %v72_v22 }
  0xc0   :  { %v834_v19 = vunpack.i.h.bf16 %v832_v17  ;;  %v833_v20 = vunpack.i.l.bf16 %v832_v17 }
  0xc2   :  { %317 = vrot.lane.b32.xlu0 %v233_v16, %s1103_s21  ;;  %319 = vrot.lane.b32.xlu1 %v234_v15, %s1103_s21  ;;  %v275_v21 = vsel %vm66_vm7, %v833_v20, %v834_v19 }
  0xc3   :  { %v865_v24 = vpack.i.bf16 %v834_v19, %v275_v21 }
  0xc6   :  { %866 = vrot.lane.b32.xlu0 %v865_v24, %s1097_s17 }
  0xca   :  { %871 = vrot.lane.b32.xlu0 %v870_v25, %s1097_s17 }
 0x114   :  { %v1299_v26 = vpop.permute.xlu1 %238  ;;  %v1301_v27 = vpop.permute.xlu0 %249 }
 0x11c   :  { %v1303_v30 = vpop.permute.xlu1 %261 }
 0x120   :  { %v1305_v31 = vpop.permute.xlu0 %283  ;;  %v847_v32 = vpop.permute.xlu1 %846 }
 0x121   :  { %v849_v38 = vunpack.i.h.bf16 %v847_v32  ;;  %v848_v39 = vunpack.i.l.bf16 %v847_v32 }
 0x123   :  { %v268_v54 = vsel %vm89_vm1, %v848_v39, %v849_v38  ;;  %v267_v7 = vsel %vm89_vm1, %v1303_v30, %v848_v39 }
 0x124   :  { %v852_v33 = vpop.permute.xlu1 %851  ;;  %v837_v34 = vpop.permute.xlu0 %836  ;;  %v890_v59 = vpack.i.bf16 %v849_v38, %v268_v54  ;;  %v1104_v38 = vmov 0.0  }
 0x125   :  { %v839_v41 = vunpack.i.h.bf16 %v837_v34  ;;  %v838_v43 = vunpack.i.l.bf16 %v837_v34  ;;  %v854_v61 = vunpack.i.h.bf16 %v852_v33  ;;  %v853_v62 = vunpack.i.l.bf16 %v852_v33  ;;  %490 = vmatprep.mubr.f32.mxu0 %v1104_v38  ;;  %742 = vmatprep.mubr.f32.mxu1 %v1104_v38 }
 0x127   :  { %v245_v45 = vsel %vm135_vm0, %v838_v43, %v839_v41  ;;  %v244_v47 = vsel %vm135_vm0, %v1299_v26, %v838_v43  ;;  %v895_v10 = vpack.i.bf16 %v853_v62, %v833_v20  ;;  %v286_v15 = vsel %vm285_vm10, %v853_v62, %v854_v61 }
 0x128   :  { %v875_v48 = vpack.i.bf16 %v839_v41, %v245_v45  ;;  %v842_v49 = vpop.permute.xlu0 %841  ;;  %v880_v51 = vpack.i.bf16 %v244_v47, %v71_v44  ;;  %v857_v53 = vpop.permute.xlu1 %856  ;;  %v287_v21 = vsel %vm285_vm10, %v854_v61, %v1305_v31  ;;  %v1105_v43 = vmov 0   ;;  %v51_v45 = vld [vmem:[%s1481_s3] sm:$0xff] }
 0x129   :  { %v844_v55 = vunpack.i.h.bf16 %v842_v49  ;;  %v843_v56 = vunpack.i.l.bf16 %v842_v49  ;;  %v859_v16 = vunpack.i.h.bf16 %v857_v53  ;;  %v858_v17 = vunpack.i.l.bf16 %v857_v53  ;;  %925 = vset.pattern.permute.xlu1 %v1105_v43  ;;  %1016 = vset.pattern.permute.xlu0 %v1105_v43 }
 0x12a   :  { %876 = vrot.lane.b32.xlu1 %v875_v48, %s1097_s17  ;;  %881 = vrot.lane.b32.xlu0 %v880_v51, %s1097_s17  ;;  %v905_v20 = vpack.i.bf16 %v287_v21, %v286_v15 }
 0x12b   :  { %v257_v58 = vsel %vm255_vm8, %v843_v56, %v844_v55  ;;  %v256_v6 = vsel %vm255_vm8, %v1301_v27, %v843_v56  ;;  %v298_v25 = vsel %vm297_vm11, %v858_v17, %v859_v16 }
 0x12c   :  { %v885_v63 = vpack.i.bf16 %v844_v55, %v257_v58  ;;  %v1314_v1 = vpop.permute.xlu0 %295  ;;  %v862_v2 = vpop.permute.xlu1 %861  ;;  %v900_v11 = vpack.i.bf16 %v267_v7, %v256_v6 }
 0x12d   :  { %v864_v4 = vunpack.i.h.bf16 %v862_v2  ;;  %v863_v5 = vunpack.i.l.bf16 %v862_v2  ;;  %v299_v32 = vsel %vm297_vm11, %v859_v16, %v1314_v1 }
 0x12e   :  { %886 = vrot.lane.b32.xlu1 %v885_v63, %s1097_s17  ;;  %891 = vrot.lane.b32.xlu0 %v890_v59, %s1097_s17  ;;  %v910_v34 = vpack.i.bf16 %v299_v32, %v298_v25 }
 0x12f   :  { %v310_v9 = vsel %vm309_vm9, %v863_v5, %v864_v4  ;;  %v915_v39 = vpack.i.bf16 %v863_v5, %v858_v17 }
 0x130   :  { %v1323_v13 = vpop.permute.xlu0 %307  ;;  %v316_v23 = vpop.permute.xlu1 %315 }
 0x131   :  { %v311_v19 = vsel %vm309_vm9, %v864_v4, %v1323_v13 }
 0x132   :  { %901 = vrot.lane.b32.xlu1 %v900_v11, %s1097_s17  ;;  %896 = vrot.lane.b32.xlu0 %v895_v10, %s1097_s17  ;;  %v920_v22 = vpack.i.bf16 %v311_v19, %v310_v9 }
 0x134   :  { %v318_v24 = vpop.permute.xlu0 %317  ;;  %v1340_v41 = vpop.permute.xlu1 %319 }
 0x135   :  { %v322_v33 = vsel %vm321_vm12, %v316_v23, %v318_v24  ;;  %v323_v44 = vsel %vm321_vm12, %v318_v24, %v1340_v41 }
 0x136   :  { %906 = vrot.lane.b32.xlu1 %v905_v20, %s1097_s17  ;;  %921 = vrot.lane.b32.xlu0 %v920_v22, %s1097_s17 }
 0x138   :  { %v867_v47 = vpop.permute.xlu0 %866 }
 0x139   :  { %v869_v24 = vunpack.i.h.bf16 %v867_v47  ;;  %v868_v25 = vunpack.i.l.bf16 %v867_v47 }
 0x13a   :  { %911 = vrot.lane.b32.xlu1 %v910_v34, %s1097_s17  ;;  %382 = vrot.lane.b32.xlu0 %v322_v33, %s1097_s17 }
 0x13c   :  { %v872_v48 = vpop.permute.xlu0 %871 }
 0x13d   :  { %v874_v49 = vunpack.i.h.bf16 %v872_v48  ;;  %v873_v51 = vunpack.i.l.bf16 %v872_v48 }
 0x13e   :  { %916 = vrot.lane.b32.xlu1 %v915_v39, %s1097_s17  ;;  %380 = vrot.lane.b32.xlu0 %v316_v23, %s1097_s17 }
 0x13f   :  { %v387_v61 = vsel %vm227_vm6, %v873_v51, %v874_v49  ;;  %v395_v49 = vsel %vm227_vm6, %v868_v25, %v869_v24 }
 0x142   :  { %384 = vrot.lane.b32.xlu1 %v323_v44, %s1097_s17 }
 0x146   :  { %326 = vperm.xlu1 %925, %v51_v45  }
 0x19c   :  { %v877_v53 = vpop.permute.xlu1 %876  ;;  %v1350_v54 = vpop.permute.xlu0 %881 }
 0x19d   :  { %v879_v55 = vunpack.i.h.bf16 %v877_v53  ;;  %v878_v56 = vunpack.i.l.bf16 %v877_v53  ;;  %v884_v58 = vunpack.i.h.bf16 %v1350_v54  ;;  %v883_v59 = vunpack.i.l.bf16 %v1350_v54 }
 0x19f   :  { %v389_v62 = vsel %vm227_vm6, %v878_v56, %v879_v55  ;;  %v386_v63 = vsel %vm227_vm6, %v883_v59, %v873_v51  ;;  %v388_v2 = vsel %vm227_vm6, %v884_v58, %v878_v56 }
 0x1a0   :  { %v887_v4 = vpop.permute.xlu1 %886  ;;  %v892_v5 = vpop.permute.xlu0 %891  ;;  %v780_v6 = vpack.c.bf16 %v389_v62, %v387_v61  ;;  %v782_v7 = vpack.c.bf16 %v388_v2, %v386_v63 }
 0x1a1   :  { %v889_v9 = vunpack.i.h.bf16 %v887_v4  ;;  %v888_v10 = vunpack.i.l.bf16 %v887_v4  ;;  %v894_v11 = vunpack.i.h.bf16 %v892_v5  ;;  %v893_v15 = vunpack.i.l.bf16 %v892_v5 }
 0x1a2   :  { %781 = vmatprep.subr.bf16.mxu0 %v780_v6 }
 0x1a3   :  { %783 = vmatpush1.bf16.msra.mxu0 %v782_v7  ;;  %v391_v16 = vsel %vm227_vm6, %v888_v10, %v889_v9  ;;  %v393_v17 = vsel %vm227_vm6, %v893_v15, %v894_v11 }
 0x1a4   :  { %v902_v19 = vpop.permute.xlu1 %901  ;;  %v897_v21 = vpop.permute.xlu0 %896  ;;  %v784_v22 = vpack.c.bf16 %v393_v17, %v391_v16 }
 0x1a5   :  { %v904_v20 = vunpack.i.h.bf16 %v902_v19  ;;  %v903_v23 = vunpack.i.l.bf16 %v902_v19  ;;  %v898_v32 = vunpack.i.l.bf16 %v897_v21  ;;  %v899_v44 = vunpack.i.h.bf16 %v897_v21 }
 0x1a6   :  { %785 = vmatprep.subr.bf16.mxu0 %v784_v22 }
 0x1a7   :  { %v390_v33 = vsel %vm227_vm6, %v903_v23, %v888_v10  ;;  %v392_v34 = vsel %vm227_vm6, %v904_v20, %v893_v15  ;;  %v394_v51 = vsel %vm227_vm6, %v898_v32, %v868_v25  ;;  %v50_v20 = vld [vmem:[#allocation5] sm:$0xff] }
 0x1a8   :  { %v907_v38 = vpop.permute.xlu1 %906  ;;  %v922_v39 = vpop.permute.xlu0 %921  ;;  %v786_v43 = vpack.c.bf16 %v392_v34, %v390_v33 }
 0x1a9   :  { %v909_v45 = vunpack.i.h.bf16 %v907_v38  ;;  %v908_v48 = vunpack.i.l.bf16 %v907_v38  ;;  %v924_v53 = vunpack.i.h.bf16 %v922_v39  ;;  %v923_v55 = vunpack.i.l.bf16 %v922_v39 }
 0x1aa   :  { %787 = vmatpush1.bf16.msra.mxu0 %v786_v43 }
 0x1ab   :  { %v397_v47 = vsel %vm227_vm6, %v908_v48, %v909_v45  ;;  %v396_v56 = vsel %vm227_vm6, %v899_v44, %v908_v48  ;;  %v401_v5 = vsel %vm227_vm6, %v923_v55, %v924_v53 }
 0x1ac   :  { %v912_v58 = vpop.permute.xlu1 %911  ;;  %v788_v61 = vpack.c.bf16 %v397_v47, %v395_v49  ;;  %v790_v62 = vpack.c.bf16 %v396_v56, %v394_v51  ;;  %v383_v6 = vpop.permute.xlu0 %382 }
 0x1ad   :  { %v914_v63 = vunpack.i.h.bf16 %v912_v58  ;;  %v913_v2 = vunpack.i.l.bf16 %v912_v58 }
 0x1ae   :  { %789 = vmatprep.subr.bf16.mxu0 %v788_v61 }
 0x1af   :  { %791 = vmatpush1.bf16.msra.mxu0 %v790_v62  ;;  %v399_v4 = vsel %vm227_vm6, %v913_v2, %v914_v63 }
 0x1b0   :  { %v917_v7 = vpop.permute.xlu1 %916  ;;  %v792_v9 = vpack.c.bf16 %v401_v5, %v399_v4  ;;  %v381_v22 = vpop.permute.xlu0 %380 }
 0x1b1   :  { %v919_v10 = vunpack.i.h.bf16 %v917_v7  ;;  %v918_v11 = vunpack.i.l.bf16 %v917_v7  ;;  %v402_v23 = vsel %vm227_vm6, %v381_v22, %v383_v6 }
 0x1b2   :  { %793 = vmatprep.subr.bf16.mxu0 %v792_v9 }
 0x1b3   :  { %v398_v15 = vsel %vm227_vm6, %v918_v11, %v913_v2  ;;  %v400_v16 = vsel %vm227_vm6, %v919_v10, %v923_v55 }
 0x1b4   :  { %v385_v17 = vpop.permute.xlu1 %384  ;;  %v794_v19 = vpack.c.bf16 %v400_v16, %v398_v15 }
 0x1b5   :  { %v403_v21 = vsel %vm227_vm6, %v383_v6, %v385_v17 }
 0x1b6   :  { %795 = vmatpush1.bf16.msra.mxu0 %v794_v19 }
 0x1b7   :  { %442 = vmatprep.subr.mxu0 %v403_v21 }
 0x1ba   :  { %443 = vmatpush1.msra.mxu0 %v402_v23 }
 0x1bb   :  { %778 = vmatmul.mubr.msk.f32.vlgmr.msra.gmra.mrb[0].mxu0 %vm422_vm13, %v50_v20 }
 0x1c5   :  { %v327_v24 = vpop.permute.xlu1 %326 }
 0x28e   :  { %v492_v25 = vpop.f32.mrb[0].mxu0 }
 0x28f   :  { %v493_v32 = vadd.f32 %v492_v25, %v327_v24  ;;  %v494_v33 = vpop.f32.mrb[1].mxu0 }
 0x290   :  { %v495_v34 = vadd.f32 %v494_v33, %v327_v24 }
 0x291   :  { %v497_v38 = vmax.f32 %v493_v32, 0.0 }
 0x292   :  { %v498_v39 = vmax.f32 %v495_v34, 0.0 }
 0x293   :  { %v505_v43 = vmul.f32 %v497_v38, %v1238_v52  ;;  %v503_v44 = vmul.f32 %v497_v38, %v1221_v42  ;;  %v507_v45 = vmul.f32 %v497_v38, %v1217_v40  ;;  %v511_v48 = vmul.f32 %v497_v38, %v1246_v57 }
 0x294   :  { %v506_v49 = vmul.f32 %v498_v39, %v1207_v35  ;;  %v504_v51 = vmul.f32 %v498_v39, %v1209_v36  ;;  %v936_v53 = vpack.i.bf16 %v498_v39, %v497_v38  ;;  %v508_v55 = vmul.f32 %v498_v39, %v1211_v37 }
 0x295   :  { %v512_v47 = vmul.f32 %v498_v39, %v1251_v60  ;;  %v509_v56 = vmul.f32 %v497_v38, %v1228_v46  ;;  %v510_v58 = vmul.f32 %v498_v39, %v1233_v50  ;;  %v513_v40 = vmul.f32 %v497_v38, %v1259_v0 }
 0x296   :  { %v931_v52 = vpack.i.bf16 %v506_v49, %v505_v43  ;;  %v926_v61 = vpack.i.bf16 %v504_v51, %v503_v44  ;;  %v941_v42 = vpack.i.bf16 %v508_v55, %v507_v45  ;;  %v514_v35 = vmul.f32 %v498_v39, %v1262_v3 }
 0x297   :  { %v951_v62 = vpack.i.bf16 %v512_v47, %v511_v48  ;;  %v946_v57 = vpack.i.bf16 %v510_v58, %v509_v56  ;;  %v501_v36 = vmul.f32 %v497_v38, %v1288_v18  ;;  %v502_v37 = vmul.f32 %v498_v39, %v1280_v14 }
 0x298   :  { %932 = vrot.lane.b32.xlu1 %v931_v52, %s1099_s1  ;;  %927 = vrot.lane.b32.xlu0 %v926_v61, %s1093_s29  ;;  %v956_v46 = vpack.i.bf16 %v514_v35, %v513_v40  ;;  %v515_v50 = vmul.f32 %v497_v38, %v1270_v8  ;;  %v516_v0 = vmul.f32 %v498_v39, %v1278_v12 }
 0x299   :  { %v961_v60 = vpack.i.bf16 %v502_v37, %v501_v36 }
 0x29c   :  { %937 = vrot.lane.b32.xlu1 %v936_v53, %s1098_s18  ;;  %942 = vrot.lane.b32.xlu0 %v941_v42, %s1092_s24 }
 0x2a0   :  { %952 = vrot.lane.b32.xlu1 %v951_v62, %s1101_s19  ;;  %947 = vrot.lane.b32.xlu0 %v946_v57, %s1100_s0 }
 0x2a4   :  { %574 = vrot.lane.b32.xlu1 %v515_v50, %s1103_s21  ;;  %957 = vrot.lane.b32.xlu0 %v956_v46, %s1102_s20 }
 0x2a8   :  { %576 = vrot.lane.b32.xlu0 %v516_v0, %s1103_s21  ;;  %962 = vrot.lane.b32.xlu1 %v961_v60, %s1097_s17 }
 0x30a   :  { %v933_v3 = vpop.permute.xlu1 %932  ;;  %v928_v14 = vpop.permute.xlu0 %927 }
 0x30b   :  { %v934_v18 = vunpack.i.l.bf16 %v933_v3  ;;  %v935_v63 = vunpack.i.h.bf16 %v933_v3  ;;  %v930_v2 = vunpack.i.h.bf16 %v928_v14  ;;  %v929_v4 = vunpack.i.l.bf16 %v928_v14 }
 0x30d   :  { %v531_v11 = vsel %vm255_vm8, %v1301_v27, %v934_v18  ;;  %v523_v21 = vsel %vm135_vm0, %v1299_v26, %v929_v4  ;;  %v532_v22 = vsel %vm255_vm8, %v934_v18, %v935_v63  ;;  %v524_v20 = vsel %vm135_vm0, %v929_v4, %v930_v2 }
 0x30e   :  { %v938_v5 = vpop.permute.xlu1 %937  ;;  %v943_v6 = vpop.permute.xlu0 %942  ;;  %v981_v27 = vpack.i.bf16 %v532_v22, %v523_v21 }
 0x30f   :  { %v940_v7 = vunpack.i.h.bf16 %v938_v5  ;;  %v939_v8 = vunpack.i.l.bf16 %v938_v5  ;;  %v945_v9 = vunpack.i.h.bf16 %v943_v6  ;;  %v944_v10 = vunpack.i.l.bf16 %v943_v6 }
 0x311   :  { %v966_v12 = vpack.i.bf16 %v531_v11, %v945_v9  ;;  %v539_v15 = vsel %vm89_vm1, %v1303_v30, %v944_v10  ;;  %v547_v16 = vsel %vm66_vm7, %v939_v8, %v940_v7  ;;  %v976_v30 = vpack.i.bf16 %v930_v2, %v524_v20 }
 0x312   :  { %v948_v17 = vpop.permute.xlu0 %947  ;;  %v971_v19 = vpack.i.bf16 %v547_v16, %v539_v15  ;;  %v953_v23 = vpop.permute.xlu1 %952  ;;  %v540_v26 = vsel %vm89_vm1, %v944_v10, %v945_v9 }
 0x313   :  { %v950_v24 = vunpack.i.h.bf16 %v948_v17  ;;  %v949_v25 = vunpack.i.l.bf16 %v948_v17  ;;  %967 = vrot.lane.b32.xlu1 %v966_v12, %s1097_s17  ;;  %v955_v32 = vunpack.i.h.bf16 %v953_v23  ;;  %v954_v33 = vunpack.i.l.bf16 %v953_v23 }
 0x314   :  { %972 = vrot.lane.b32.xlu0 %v971_v19, %s1097_s17  ;;  %v986_v45 = vpack.i.bf16 %v540_v26, %v935_v63 }
 0x315   :  { %v554_v34 = vsel %vm285_vm10, %v949_v25, %v950_v24  ;;  %v562_v43 = vsel %vm297_vm11, %v954_v33, %v955_v32  ;;  %v555_v49 = vsel %vm285_vm10, %v950_v24, %v1305_v31  ;;  %v563_v58 = vsel %vm297_vm11, %v955_v32, %v1314_v1  ;;  %v500_v1 = vld [vmem:[%s1483_s5] sm:$0xff] }
 0x316   :  { %v958_v38 = vpop.permute.xlu0 %957  ;;  %v991_v39 = vpack.i.bf16 %v554_v34, %v940_v7  ;;  %v1001_v51 = vpack.i.bf16 %v562_v43, %v949_v25  ;;  %v996_v53 = vpack.i.bf16 %v939_v8, %v555_v49  ;;  %v575_v31 = vpop.permute.xlu1 %574 }
 0x317   :  { %982 = vrot.lane.b32.xlu1 %v981_v27, %s1097_s17  ;;  %v960_v44 = vunpack.i.h.bf16 %v958_v38  ;;  %v959_v48 = vunpack.i.l.bf16 %v958_v38 }
 0x318   :  { %977 = vrot.lane.b32.xlu0 %v976_v30, %s1097_s17 }
 0x319   :  { %v571_v55 = vsel %vm309_vm9, %v960_v44, %v1323_v13  ;;  %v570_v47 = vsel %vm309_vm9, %v959_v48, %v960_v44 }
 0x31a   :  { %v1011_v56 = vpack.i.bf16 %v954_v33, %v571_v55  ;;  %v1006_v52 = vpack.i.bf16 %v570_v47, %v563_v58  ;;  %v577_v61 = vpop.permute.xlu0 %576  ;;  %v963_v40 = vpop.permute.xlu1 %962 }
 0x31b   :  { %992 = vrot.lane.b32.xlu1 %v991_v39, %s1097_s17  ;;  %v578_v42 = vsel %vm321_vm12, %v575_v31, %v577_v61  ;;  %v579_v13 = vsel %vm321_vm12, %v577_v61, %v1340_v41  ;;  %v965_v35 = vunpack.i.h.bf16 %v963_v40  ;;  %v964_v36 = vunpack.i.l.bf16 %v963_v40  ;;  %v499_v40 = vld [vmem:[%s1482_s4] sm:$0xff]  ;;  %s1061_s4 = scalar_lea.vmem %s762_s26, 256 }
 0x31c   :  { %987 = vrot.lane.b32.xlu0 %v986_v45, %s1097_s17  ;;  %p1062_p2 = scmp.ne.s32.totalorder %s762_s26, %s1061_s4  ;;  %p1067_p4 = scmp.lt.s32.totalorder %s1061_s4, %s1061_s4 }
 0x31d   :  { %v640_v41 = vsel %vm227_vm6, %v964_v36, %v965_v35  ;;  %v639_v63 = vsel %vm227_vm6, %v883_v59, %v964_v36 }
 0x31e   :  { %p1068_p5 = por %p1067_p4, %p1066_p3 }
 0x31f   :  { %1002 = vrot.lane.b32.xlu1 %v1001_v51, %s1097_s17 }
 0x320   :  { %997 = vrot.lane.b32.xlu0 %v996_v53, %s1097_s17  ;;  %p1069_p6 = pnand %p1068_p5, %p1062_p2 }
 0x323   :  { %1012 = vrot.lane.b32.xlu1 %v1011_v56, %s1097_s17 }
 0x324   :  { %1007 = vrot.lane.b32.xlu0 %v1006_v52, %s1097_s17 }
 0x327   :  { %635 = vrot.lane.b32.xlu1 %v578_v42, %s1097_s17 }
 0x328   :  { %627 = vrot.lane.b32.xlu0 %v959_v48, %s1097_s17 }
 0x32b   :  { %633 = vrot.lane.b32.xlu1 %v575_v31, %s1097_s17 }
 0x32c   :  { %637 = vrot.lane.b32.xlu0 %v579_v13, %s1097_s17 }
 0x330   :  { %582 = vperm.xlu0 %1016, %v500_v1  }
 0x385   :  { %v968_v62 = vpop.permute.xlu1 %967 }
 0x386   :  { %v973_v57 = vpop.permute.xlu0 %972  ;;  %v970_v4 = vunpack.i.h.bf16 %v968_v62  ;;  %v969_v8 = vunpack.i.l.bf16 %v968_v62 }
 0x387   :  { %v974_v9 = vunpack.i.l.bf16 %v973_v57  ;;  %v975_v24 = vunpack.i.h.bf16 %v973_v57 }
 0x389   :  { %v983_v37 = vpop.permute.xlu1 %982 }
 0x38a   :  { %v984_v46 = vunpack.i.l.bf16 %v983_v37  ;;  %v978_v60 = vpop.permute.xlu0 %977  ;;  %v985_v3 = vunpack.i.h.bf16 %v983_v37 }
 0x38b   :  { %v980_v50 = vunpack.i.h.bf16 %v978_v60  ;;  %v979_v0 = vunpack.i.l.bf16 %v978_v60 }
 0x38c   :  { %v643_v12 = vsel %vm227_vm6, %v970_v4, %v985_v3 }
 0x38d   :  { %v993_v14 = vpop.permute.xlu1 %992  ;;  %v642_v18 = vsel %vm227_vm6, %v979_v0, %v980_v50  ;;  %v641_v2 = vsel %vm227_vm6, %v984_v46, %v979_v0 }
 0x38e   :  { %v988_v5 = vpop.permute.xlu0 %987  ;;  %v796_v6 = vpack.c.bf16 %v642_v18, %v640_v41  ;;  %v798_v7 = vpack.c.bf16 %v641_v2, %v639_v63  ;;  %v994_v15 = vunpack.i.l.bf16 %v993_v14  ;;  %v995_v19 = vunpack.i.h.bf16 %v993_v14 }
 0x38f   :  { %v990_v10 = vunpack.i.h.bf16 %v988_v5  ;;  %v989_v11 = vunpack.i.l.bf16 %v988_v5 }
 0x390   :  { %797 = vmatprep.subr.bf16.mxu1 %v796_v6  ;;  %v648_v33 = vsel %vm227_vm6, %v975_v24, %v994_v15 }
 0x391   :  { %v1003_v16 = vpop.permute.xlu1 %1002  ;;  %799 = vmatpush1.bf16.msra.mxu1 %v798_v7  ;;  %v644_v54 = vsel %vm227_vm6, %v985_v3, %v989_v11  ;;  %v646_v59 = vsel %vm227_vm6, %v990_v10, %v969_v8  ;;  %v645_v17 = vsel %vm227_vm6, %v974_v9, %v990_v10 }
 0x392   :  { %v1004_v21 = vunpack.i.l.bf16 %v1003_v16  ;;  %v998_v22 = vpop.permute.xlu0 %997  ;;  %v800_v20 = vpack.c.bf16 %v646_v59, %v644_v54  ;;  %v802_v23 = vpack.c.bf16 %v645_v17, %v643_v12  ;;  %v1005_v45 = vunpack.i.h.bf16 %v1003_v16 }
 0x393   :  { %v1000_v25 = vunpack.i.h.bf16 %v998_v22  ;;  %v999_v27 = vunpack.i.l.bf16 %v998_v22 }
 0x394   :  { %801 = vmatprep.subr.bf16.mxu1 %v800_v20  ;;  %v649_v30 = vsel %vm227_vm6, %v1004_v21, %v995_v19 }
 0x395   :  { %v1013_v32 = vpop.permute.xlu1 %1012  ;;  %803 = vmatpush1.bf16.msra.mxu1 %v802_v23  ;;  %v650_v34 = vsel %vm227_vm6, %v995_v19, %v999_v27  ;;  %v647_v38 = vsel %vm227_vm6, %v1000_v25, %v975_v24 }
 0x396   :  { %v1014_v26 = vunpack.i.l.bf16 %v1013_v32  ;;  %v1008_v39 = vpop.permute.xlu0 %1007  ;;  %v804_v43 = vpack.c.bf16 %v650_v34, %v648_v33  ;;  %v806_v44 = vpack.c.bf16 %v649_v30, %v647_v38  ;;  %v1015_v48 = vunpack.i.h.bf16 %v1013_v32 }
 0x397   :  { %v1010_v49 = vunpack.i.h.bf16 %v1008_v39  ;;  %v1009_v51 = vunpack.i.l.bf16 %v1008_v39 }
 0x398   :  { %805 = vmatprep.subr.bf16.mxu1 %v804_v43  ;;  %v651_v52 = vsel %vm227_vm6, %v1015_v48, %v1005_v45 }
 0x399   :  { %v636_v53 = vpop.permute.xlu1 %635  ;;  %807 = vmatpush1.bf16.msra.mxu1 %v806_v44  ;;  %v652_v55 = vsel %vm227_vm6, %v1005_v45, %v1009_v51  ;;  %v654_v47 = vsel %vm227_vm6, %v1010_v49, %v1014_v26 }
 0x39a   :  { %v628_v56 = vpop.permute.xlu0 %627  ;;  %v808_v58 = vpack.c.bf16 %v654_v47, %v652_v55 }
 0x39b   :  { %v653_v61 = vsel %vm227_vm6, %v628_v56, %v1010_v49 }
 0x39c   :  { %v810_v31 = vpack.c.bf16 %v653_v61, %v651_v52  ;;  %809 = vmatprep.subr.bf16.mxu1 %v808_v58 }
 0x39d   :  { %v634_v42 = vpop.permute.xlu1 %633 }
 0x39e   :  { %v638_v13 = vpop.permute.xlu0 %637  ;;  %811 = vmatpush1.bf16.msra.mxu1 %v810_v31  ;;  %v655_v62 = vsel %vm227_vm6, %v634_v42, %v636_v53 }
 0x39f   :  { %v656_v1 = vsel %vm227_vm6, %v636_v53, %v638_v13 }
 0x3a0   :  { %694 = vmatprep.subr.mxu1 %v656_v1 }
 0x3a2   :  { %695 = vmatpush1.msra.mxu1 %v655_v62 }
 0x3a3   :  { %779 = vmatmul.mubr.msk.f32.vlgmr.msra.gmra.mrb[0].mxu1 %vm422_vm13, %v499_v40 }
 0x3af   :  { %v583_v57 = vpop.permute.xlu0 %582 }
 0x476   :  { %v744_v35 = vpop.f32.mrb[0].mxu1 }
 0x477   :  { %v745_v36 = vadd.f32 %v744_v35, %v583_v57  ;;  %v746_v37 = vpop.f32.mrb[1].mxu1 }
 0x478   :  { %v747_v46 = vadd.f32 %v746_v37, %v583_v57 }
 0x479   :  { %v749_v60 = vadd.f32 %v745_v36, %v1196_v28 }
 0x47a   :  { %v750_v50 = vadd.f32 %v747_v46, %v1198_v29 }
 0x47b   :  { %v751_v0 = vmax.f32 %v749_v60, 0.0 }
 0x47c   :  { %v752_v3 = vmax.f32 %v750_v50, 0.0 }
 0x47d   :  { %753 = vst [vmem:[#allocation7] sm:$0xff] %v751_v0 }
 0x47e   :  { %754 = vst [vmem:[#allocation7 + $0x8] sm:$0xff] %v752_v3 }
 0x47f   :  { %1072 = shalt.err (!%p1069_p6)
}
 0x480   :  { %s1073_s29 = scalar_lea.hbm %s1484_s6, 256 }
 0x481   :  { %p1074_p7 = scmp.ne.s32.totalorder %s1484_s6, %s1073_s29  ;;  %p1077_p8 = scmp.lt.u32.totalorder %s1073_s29, %s1484_s6 }
 0x483   :  { %p1079_p9 = pnand %p1077_p8, %p1074_p7 }
 0x485   :  { %1082 = shalt.err (!%p1079_p9)
}
 0x486   :  { %764 = dma.vmem_to_hbm [thread:$0]  %s762_s26, 256, %s1484_s6, [#allocation4]  }
 0x487   :  { %1087 = dma.done.wait [#allocation4], 256  }
 0x488   :  { %1088 = vsyncadd [#allocation4], 4294967040 }
 0x489   :  { %768 = vsyncpa [#allocation3], 1 }
 0x48a   :  { %769 = vsyncpa [#allocation6], 1 }
 0x48b   :  { %770 = vsyncpa [#allocation4], 1 }

</bundles_post_ra>
